<compile_context>
chip_gen: v5e
topology: v5e:2x2
jax: 0.10.0
libtpu: 0.0.40
codegen_flags: <defaults>
</compile_context>

<pallas_src>
import functools

import jax
import jax.numpy as jnp
from jax.experimental import pallas as pl
from jax.experimental.pallas import tpu as pltpu


# ---------------------------------------------------------------------------
# Fused Linear + BatchNorm1d(eval) + LeakyReLU (+ optional residual) kernel.
# ---------------------------------------------------------------------------
def _fused_linear_kernel(*refs, negative_slope, has_residual):
    if has_residual:
        x_ref, w_ref, b_ref, scale_ref, shift_ref, res_ref, o_ref = refs
    else:
        x_ref, w_ref, b_ref, scale_ref, shift_ref, o_ref = refs

    y = jnp.dot(x_ref[...], w_ref[...], preferred_element_type=jnp.float32)
    y = (y + b_ref[...]) * scale_ref[...] + shift_ref[...]      # folded BN (eval mode)
    y = jnp.where(y > 0, y, negative_slope * y)                 # leaky_relu
    if has_residual:
        y = y + res_ref[...]
    o_ref[...] = y.astype(o_ref.dtype)


def fused_linear_bn_lrelu(x, w, b, gamma, beta, mean, var, residual=None,
                          *, negative_slope=0.01, eps=1e-5, block_n=512):
    """y = leaky_relu(BN_eval(x @ w + b)) [+ residual];  x: (B, K), w: (K, OUT)."""
    B, K = x.shape
    _, OUT = w.shape

    # Fold eval-mode BatchNorm into a per-feature scale / shift.
    scale = gamma / jnp.sqrt(var + eps)
    shift = beta - mean * scale

    TM = B                        # small batch: all rows feed one MXU call per step
    TN = min(OUT, block_n)        # lane-dense (multiple of 128) output tiles
    grid = (pl.cdiv(B, TM), pl.cdiv(OUT, TN))

    b2d = b.reshape(1, OUT)
    scale2d = scale.reshape(1, OUT)
    shift2d = shift.reshape(1, OUT)

    in_specs = [
        pl.BlockSpec((TM, K), lambda i, j: (i, 0)),     # x (full contraction per step)
        pl.BlockSpec((K, TN), lambda i, j: (0, j)),     # W column slab
        pl.BlockSpec((1, TN), lambda i, j: (0, j)),     # bias
        pl.BlockSpec((1, TN), lambda i, j: (0, j)),     # BN scale
        pl.BlockSpec((1, TN), lambda i, j: (0, j)),     # BN shift
    ]
    args = [x, w, b2d, scale2d, shift2d]
    if residual is not None:
        in_specs.append(pl.BlockSpec((TM, TN), lambda i, j: (i, j)))
        args.append(residual)

    kernel = functools.partial(
        _fused_linear_kernel,
        negative_slope=negative_slope,
        has_residual=residual is not None,
    )

    n_res = B * OUT if residual is not None else 0
    cost = pl.CostEstimate(
        flops=2 * B * K * OUT + 4 * B * OUT,
        transcendentals=0,
        bytes_accessed=4 * (B * K + K * OUT + 3 * OUT + 2 * B * OUT + n_res),
    )

    return pl.pallas_call(
        kernel,
        out_shape=jax.ShapeDtypeStruct((B, OUT), x.dtype),
        grid=grid,
        in_specs=in_specs,
        out_specs=pl.BlockSpec((TM, TN), lambda i, j: (i, j)),
        compiler_params=pltpu.CompilerParams(
            dimension_semantics=("parallel", "parallel")),
        cost_estimate=cost,
    )(*args)


# ---------------------------------------------------------------------------
# FeatureAttention kernel (2-D input, as used inside TowerModel).
#   weights = softmax(dim=1)( (tanh(x @ W1 + b1)) . w2 + b2 )
#   out     = x * weights
# For a 2-D input the score tensor is (B, 1), so the softmax axis has length 1;
# the generic per-row softmax below is kept for faithfulness.
# ---------------------------------------------------------------------------
def _feature_attention_kernel(x_ref, w1_ref, b1_ref, w2_ref, b2_ref, o_ref):
    x = x_ref[...]                                               # (TB, F)
    h = jnp.tanh(
        jnp.dot(x, w1_ref[...], preferred_element_type=jnp.float32)
        + b1_ref[...]                                            # (1, F) broadcast
    )
    # 1-output-column matvec -> VPU multiply + XLU lane reduce (skip the MXU).
    s = jnp.sum(h * w2_ref[...], axis=-1, keepdims=True) + b2_ref[0]   # (TB, 1)

    # Softmax over PyTorch dim=1 (score axis).
    m = jnp.max(s, axis=1, keepdims=True)
    e = jnp.exp(s - m)
    w = e * pl.reciprocal(jnp.sum(e, axis=1, keepdims=True), approx=False)

    o_ref[...] = (x * w).astype(o_ref.dtype)


def feature_attention(x, w1, b1, w2, b2, *, block_b=256):
    """x: (B, F);  w1: (F, F), b1: (F,), w2: (F,), b2: (1,).  Returns (B, F)."""
    B, F = x.shape
    TB = min(B, block_b)
    grid = (pl.cdiv(B, TB),)

    b1_2d = b1.reshape(1, F)
    w2_row = w2.reshape(1, F)
    b2_arr = b2.reshape(1).astype(jnp.float32)

    cost = pl.CostEstimate(
        flops=2 * B * F * F + 4 * B * F,
        transcendentals=B * F + 2 * B,
        bytes_accessed=4 * (2 * B * F + F * F + 3 * F),
    )

    return pl.pallas_call(
        _feature_attention_kernel,
        out_shape=jax.ShapeDtypeStruct((B, F), x.dtype),
        grid=grid,
        in_specs=[
            pl.BlockSpec((TB, F), lambda i: (i, 0)),                     # x
            pl.BlockSpec((F, F), lambda i: (0, 0)),                      # W1 (replicated)
            pl.BlockSpec((1, F), lambda i: (0, 0)),                      # b1
            pl.BlockSpec((1, F), lambda i: (0, 0)),                      # w2 row
            pl.BlockSpec(memory_space=pltpu.MemorySpace.SMEM),           # b2 scalar
        ],
        out_specs=pl.BlockSpec((TB, F), lambda i: (i, 0)),
        compiler_params=pltpu.CompilerParams(dimension_semantics=("parallel",)),
        cost_estimate=cost,
    )(x, w1, b1_2d, w2_row, b2_arr)


# ---------------------------------------------------------------------------
# TowerModel forward (eval mode) built from the kernels above.
# ---------------------------------------------------------------------------
def tower_model_forward(x, p):
    h1 = fused_linear_bn_lrelu(x, p["fc1_w"], p["fc1_b"], *p["bn1"])
    # dropout1: identity (eval)
    x1 = feature_attention(h1, p["att_w1"], p["att_b1"], p["att_w2"], p["att_b2"])
    h2 = fused_linear_bn_lrelu(x1, p["fc2_w"], p["fc2_b"], *p["bn2"], residual=x1)
    # dropout2: identity (eval); residual add fused into the kernel above
    h3 = fused_linear_bn_lrelu(h2, p["fc3_w"], p["fc3_b"], *p["bn3"])
    # dropout3: identity (eval)
    h4 = fused_linear_bn_lrelu(h3, p["fc4_w"], p["fc4_b"], *p["bn4"])
    return h4


# ---------------------------------------------------------------------------
# Pure-JAX reference.
# ---------------------------------------------------------------------------
def tower_model_ref(x, p, eps=1e-5, slope=0.01):
    hi = jax.lax.Precision.HIGHEST

    def mm(a, b):
        return jnp.dot(a, b, precision=hi)

    def lrelu(v):
        return jnp.where(v > 0, v, slope * v)

    def bn(v, gamma, beta, mean, var):
        return (v - mean) / jnp.sqrt(var + eps) * gamma + beta

    h = lrelu(bn(mm(x, p["fc1_w"]) + p["fc1_b"], *p["bn1"]))
    hh = jnp.tanh(mm(h, p["att_w1"]) + p["att_b1"])
    s = mm(hh, p["att_w2"].reshape(-1, 1)) + p["att_b2"]          # (B, 1)
    w = jax.nn.softmax(s, axis=1)                                 # dim=1 -> all ones
    x1 = h * w
    h2 = lrelu(bn(mm(x1, p["fc2_w"]) + p["fc2_b"], *p["bn2"])) + x1
    h3 = lrelu(bn(mm(h2, p["fc3_w"]) + p["fc3_b"], *p["bn3"]))
    h4 = lrelu(bn(mm(h3, p["fc4_w"]) + p["fc4_b"], *p["bn4"]))
    return h4


if __name__ == "__main__":
    B = 8                 # batch (multiple of 8 -> sublane aligned)
    D0 = 256              # initial_layers (multiple of 128 -> lane aligned)
    D1, D2, D3 = 1024, 256, 128   # fixed by TowerModel definition

    key = jax.random.PRNGKey(0)
    keys = jax.random.split(key, 32)
    ki = iter(keys)

    def nrm(shape, scale=1.0):
        return jax.random.normal(next(ki), shape, dtype=jnp.float32) * scale

    def bn_params(dim):
        gamma = 1.0 + 0.1 * nrm((dim,))
        beta = 0.01 * nrm((dim,))
        mean = 0.1 * nrm((dim,))
        var = jax.random.uniform(next(ki), (dim,), jnp.float32, 0.5, 1.5)
        return (gamma, beta, mean, var)

    x = nrm((B, D0))

    params = {
        "fc1_w": nrm((D0, D1), 1.0 / jnp.sqrt(D0)),
        "fc1_b": nrm((D1,), 0.01),
        "bn1": bn_params(D1),
        "att_w1": nrm((D1, D1), 1.0 / jnp.sqrt(D1)),
        "att_b1": nrm((D1,), 0.01),
        "att_w2": nrm((D1,), 1.0 / jnp.sqrt(D1)),
        "att_b2": nrm((1,), 0.01),
        "fc2_w": nrm((D1, D1), 1.0 / jnp.sqrt(D1)),
        "fc2_b": nrm((D1,), 0.01),
        "bn2": bn_params(D1),
        "fc3_w": nrm((D1, D2), 1.0 / jnp.sqrt(D1)),
        "fc3_b": nrm((D2,), 0.01),
        "bn3": bn_params(D2),
        "fc4_w": nrm((D2, D3), 1.0 / jnp.sqrt(D2)),
        "fc4_b": nrm((D3,), 0.01),
        "bn4": bn_params(D3),
    }

    out = tower_model_forward(x, params)
    out = jax.block_until_ready(out)

    ref = tower_model_ref(x, params)
    assert out.shape == (B, D3), f"bad shape {out.shape}"
    max_err = jnp.max(jnp.abs(out - ref))
    assert jnp.allclose(out, ref, atol=2e-3, rtol=2e-3), f"max abs err = {max_err}"

    print("KERNEL_OK")
</pallas_src>

<mosaic_0001>
module attributes {stable_mosaic.version = 11 : i64} {
  func.func @_fused_linear_kernel(%arg0: i32, %arg1: i32, %arg2: memref<8x256xf32, #tpu.memory_space<vmem>>, %arg3: memref<256x512xf32, #tpu.memory_space<vmem>>, %arg4: memref<1x512xf32, #tpu.memory_space<vmem>>, %arg5: memref<1x512xf32, #tpu.memory_space<vmem>>, %arg6: memref<1x512xf32, #tpu.memory_space<vmem>>, %arg7: memref<8x512xf32, #tpu.memory_space<vmem>>) attributes {dimension_semantics = [#tpu.dimension_semantics<parallel>, #tpu.dimension_semantics<parallel>], iteration_bounds = array<i64: 1, 2>, scalar_prefetch = 0 : i64, scratch_operands = 0 : i64, tpu.core_type = #tpu.core_type<tc>, window_params = [{transform_indices = @transform_0, window_bounds = array<i64: 8, 256>}, {transform_indices = @transform_1, window_bounds = array<i64: 256, 512>}, {transform_indices = @transform_2, window_bounds = array<i64: 1, 512>}, {transform_indices = @transform_3, window_bounds = array<i64: 1, 512>}, {transform_indices = @transform_4, window_bounds = array<i64: 1, 512>}, {transform_indices = @transform_5, window_bounds = array<i64: 8, 512>}]} {
    %c0 = arith.constant 0 : index
    %c0_0 = arith.constant 0 : index
    %0 = vector.load %arg2[%c0, %c0_0] : memref<8x256xf32, #tpu.memory_space<vmem>>, vector<8x256xf32>
    %c0_1 = arith.constant 0 : index
    %c0_2 = arith.constant 0 : index
    %1 = vector.load %arg3[%c0_1, %c0_2] : memref<256x512xf32, #tpu.memory_space<vmem>>, vector<256x512xf32>
    %cst = arith.constant dense<0.000000e+00> : vector<8x512xf32>
    %2 = tpu.matmul %0, %1, %cst {dimension_numbers = #tpu.dot_dimension_numbers<[1], [0], [0], [1], [0, 0, 1, 1], [], []>} : vector<8x256xf32>, vector<256x512xf32>, vector<8x512xf32> -> vector<8x512xf32>
    %c0_3 = arith.constant 0 : index
    %c0_4 = arith.constant 0 : index
    %3 = vector.load %arg4[%c0_3, %c0_4] : memref<1x512xf32, #tpu.memory_space<vmem>>, vector<1x512xf32>
    %4 = vector.broadcast %3 : vector<1x512xf32> to vector<8x512xf32>
    %5 = arith.addf %2, %4 : vector<8x512xf32>
    %c0_5 = arith.constant 0 : index
    %c0_6 = arith.constant 0 : index
    %6 = vector.load %arg5[%c0_5, %c0_6] : memref<1x512xf32, #tpu.memory_space<vmem>>, vector<1x512xf32>
    %7 = vector.broadcast %6 : vector<1x512xf32> to vector<8x512xf32>
    %8 = arith.mulf %5, %7 : vector<8x512xf32>
    %c0_7 = arith.constant 0 : index
    %c0_8 = arith.constant 0 : index
    %9 = vector.load %arg6[%c0_7, %c0_8] : memref<1x512xf32, #tpu.memory_space<vmem>>, vector<1x512xf32>
    %10 = vector.broadcast %9 : vector<1x512xf32> to vector<8x512xf32>
    %11 = arith.addf %8, %10 : vector<8x512xf32>
    %cst_9 = arith.constant 0.000000e+00 : f32
    %12 = vector.broadcast %cst_9 : f32 to vector<8x512xf32>
    %13 = arith.cmpf ogt, %11, %12 : vector<8x512xf32>
    %cst_10 = arith.constant 0.00999999977 : f32
    %14 = vector.broadcast %cst_10 : f32 to vector<8x512xf32>
    %15 = arith.mulf %14, %11 : vector<8x512xf32>
    %16 = arith.select %13, %11, %15 : vector<8x512xi1>, vector<8x512xf32>
    %c0_11 = arith.constant 0 : index
    %c0_12 = arith.constant 0 : index
    %17 = vector.load %arg7[%c0_11, %c0_12] : memref<8x512xf32, #tpu.memory_space<vmem>>, vector<8x512xf32>
    tpu.vector_store %arg7[%c0_11, %c0_12], %16 {strides = array<i32>} : memref<8x512xf32, #tpu.memory_space<vmem>>, vector<8x512xf32>,
    return
  }
  func.func @transform_0(%arg0: i32, %arg1: i32) -> (i32, i32) {
    %c0_i32 = arith.constant 0 : i32
    %c0_i32_0 = arith.constant 0 : i32
    return %arg0, %c0_i32 : i32, i32
  }
  func.func @transform_1(%arg0: i32, %arg1: i32) -> (i32, i32) {
    %c0_i32 = arith.constant 0 : i32
    %c0_i32_0 = arith.constant 0 : i32
    return %c0_i32, %arg1 : i32, i32
  }
  func.func @transform_2(%arg0: i32, %arg1: i32) -> (i32, i32) {
    %c0_i32 = arith.constant 0 : i32
    %c0_i32_0 = arith.constant 0 : i32
    return %c0_i32, %arg1 : i32, i32
  }
  func.func @transform_3(%arg0: i32, %arg1: i32) -> (i32, i32) {
    %c0_i32 = arith.constant 0 : i32
    %c0_i32_0 = arith.constant 0 : i32
    return %c0_i32, %arg1 : i32, i32
  }
  func.func @transform_4(%arg0: i32, %arg1: i32) -> (i32, i32) {
    %c0_i32 = arith.constant 0 : i32
    %c0_i32_0 = arith.constant 0 : i32
    return %c0_i32, %arg1 : i32, i32
  }
  func.func @transform_5(%arg0: i32, %arg1: i32) -> (i32, i32) {
    %c0_i32 = arith.constant 0 : i32
    return %arg0, %arg1 : i32, i32
  }
}

</mosaic_0001>

<bundles_post_ra>
// kernel: tpu_custom_call.1
= control target key start
LH: loop header
LB: loop body
LE: loop exit
PB: predicated region body
PF: predicated region fallthrough
CT: control target
= control target key end

     0   :  { %s1651_s0 = inlined_call_operand.hbm [shape: f32[8,256], index: 0, kind: input, shape index: {}]   ;;  %s1652_s1 = inlined_call_operand.hbm [shape: f32[256,1024], index: 1, kind: input, shape index: {}]   ;;  %s1653_s2 = inlined_call_operand.hbm [shape: f32[1,1024], index: 2, kind: input, shape index: {}]   ;;  %s1654_s3 = inlined_call_operand.hbm [shape: f32[1,1024], index: 3, kind: input, shape index: {}]   ;;  %s1655_s4 = inlined_call_operand.hbm [shape: f32[1,1024], index: 4, kind: input, shape index: {}]   ;;  %s1656_s5 = inlined_call_operand.hbm [shape: f32[8,1024], index: 5, kind: output, shape index: {}]  }
   0x1   :  { %1659 = sst [smem:[#allocation19_spill]] %s1651_s0 }
   0x2   :  { %1660 = sst [smem:[#allocation20_spill]] %s1652_s1 }
   0x3   :  { %1661 = sst [smem:[#allocation21_spill]] %s1654_s3 }
   0x4   :  { %10 = vsyncpa [#allocation3], 0 }
   0x5   :  { %11 = vsyncpa [#allocation6], 0 }
   0x6   :  { %13 = vsyncpa [#allocation6 + $0x1], 0 }
   0x7   :  { %14 = vsyncpa [#allocation9], 0 }
   0x8   :  { %16 = vsyncpa [#allocation9 + $0x1], 0 }
   0x9   :  { %17 = vsyncpa [#allocation4], 0 }
   0xa   :  { %19 = vsyncpa [#allocation4 + $0x1], 0  ;;  %s1314_s18 = smov 0   ;;  %s1316_s19 = smov 0  }
   0xb   :  { %s1318_s20 = smov 0   ;;  %s1320_s21 = smov 0  }
   0xc   :  { %s1322_s22 = smov 0   ;;  %s1324_s23 = smov 0  }
   0xd LB: > { %1662 = sst [smem:[#allocation16_spill]] %s1274_s22  ;;  %s34_s24 = sadd.s32 1, %s1274_s22  ;;  %s1278_s23 = sphi %s1324_s23, %s25_s23   ;;  %s1274_s22 = sphi %s1322_s22, %s1676_s22   ;;  %s1270_s21 = sphi %s1320_s21, %s1675_s21   ;;  %s1266_s20 = sphi %s1318_s20, %s1679_s20   ;;  %s1262_s19 = sphi %s1316_s19, %s1678_s19   ;;  %s1258_s18 = sphi %s1314_s18, %s1677_s18  }
   0xe   : > { %s70_s25 = sadd.s32 1, %s1266_s20  ;;  %p35_p0 = scmp.ge.s32.totalorder %s34_s24, 2 }
   0xf   : > { %p77_p1 = scmp.ne.s32.totalorder %s1266_s20, %s1262_s19  ;;  %p78_p2 = scmp.eq.s32.totalorder %s1278_s23, 0 }
  0x10   : > { %p923_p3 = scmp.ge.s32.totalorder %s1278_s23, 2  ;;  %s1681_s24 = smov (%p35_p0, %s34_s24), 0 }
  0x11   : > { %1663 = sst [smem:[#allocation17_spill]] %s1681_s24  ;;  %p1355_p4 = por %p78_p2, %p77_p1 }
  0x12   : > { %p983_p5 = scmp.lt.s32.totalorder %s1278_s23, 2  ;;  %s67_s27 = ssub.s32 %s1274_s22, %s1681_s24 }
  0x13   : > { %s228_s28 = sand.u32 1, %s1278_s23   ;;  %p68_p6 = scmp.eq.s32.totalorder %s67_s27, 0 }
  0x14   : > { %s230_s29 = sand.u32 1, %s1266_s20   ;;  %s945_s30 = sshll.u32 %s1274_s22, 5 }
  0x15   : > { %s1366_s6 = scalar_select %p68_p6, %s1266_s20, %s70_s25  }
  0x16   : > { %s924_s7 = sshll.u32 %s230_s29, 10  ;;  %s1666_s1 = sld [smem:[#allocation20_spill]] }
  0x17   : > { %1665 = sst [smem:[#allocation18_spill]] %s1366_s6  ;;  %s232_s12 = scalar_lea.vmem [#allocation5], %s924_s7 }
  0x18   : > { %s240_s13 = sshll.u32 %s232_s12, 4  ;;  %p1375_p7 = pnand %p983_p5, %p1355_p4  ;;  %s241_s13 = int_to_ptr.vmem [resolvable:$true] %s240_s13 }
  0x19   : > { %s1379_s15 = scalar_lea.sflag [#allocation6], %s228_s28  ;;  %s1280_s16 = smov 1024  }
  0x1a   : > { %s1281_s17 = smov 512   ;;  %s1282_s25 = smov 32  }
  0x1b   : > { %s1384_s26 = sshll.u32 %s230_s29, 2  ;;  %s1387_s27 = sshll.u32 %s1274_s22, 2 }
  0x1c   : > { %s237_s10 = scalar_lea.hbm %s1666_s1, %s945_s30  ;;  %s1668_s3 = sld [smem:[#allocation21_spill]] }
  0x1d   : > { %s238_s11 = sshll.u32 %s237_s10, 4  ;;  %s273_s9 = scalar_lea.vmem [#allocation8], %s1384_s26  ;;  %s239_s11 = int_to_ptr.hbm [resolvable:$true] %s238_s11 }
  0x1e   : > { %968 = dma.hbm_to_vmem [thread:$0]  (!%p1375_p7), %s239_s11, 16384, %s241_s13, %s1379_s15, %s1280_s16, %s1281_s17, %s1282_s25  }
  0x1f   : > { %s281_s10 = sshll.u32 %s273_s9, 4  ;;  %s1394_s11 = scalar_lea.sflag [#allocation9], %s228_s28  ;;  %s282_s10 = int_to_ptr.vmem [resolvable:$true] %s281_s10 }
  0x20   : > { %s1400_s29 = sadd.s32 4294967295, %s1278_s23   ;;  %s920_s13 = sadd.s32 4294967294, %s1278_s23  }
  0x21   : > { %p83_p8 = scmp.ne.s32.totalorder %s1262_s19, %s1258_s18  ;;  %p84_p9 = scmp.eq.s32.totalorder %s1400_s29, 0 }
  0x22   : > { %s277_s8 = scalar_lea.hbm %s1668_s3, %s1387_s27  ;;  %p187_p10 = scmp.eq.s32.totalorder %s1400_s29, 1 }
  0x23   : > { %s279_s12 = sshll.u32 %s277_s8, 4  ;;  %p193_p11 = scmp.eq.s32.totalorder %s920_s13, 1  ;;  %s280_s12 = int_to_ptr.hbm [resolvable:$true] %s279_s12 }
  0x24   : > { %974 = dma.hbm_to_vmem [thread:$0]  (!%p1375_p7), %s280_s12, 64, %s282_s10, %s1394_s11  }
  0x25   : > { %p921_p12 = scmp.ge.s32.totalorder %s1278_s23, 1  ;;  %p1410_p13 = por %p84_p9, %p83_p8 }
  0x26   : > { %p1417_p0 = por %p187_p10, %p77_p1  ;;  %p1421_p2 = por %p193_p11, %p83_p8 }
  0x27   : > { %p200_p4 = scmp.lt.s32.totalorder %s1278_s23, 3  ;;  %s1672_s0 = sld [smem:[#allocation19_spill]] }
  0x28   : > { %s1283_s9 = smov [#allocation2]   ;;  %s258_s25 = scalar_lea.hbm %s1653_s2, %s1387_s27 }
  0x29   : > { %p1429_p5 = pnand %p921_p12, %p200_p4  ;;  %s217_s10 = sshll.u32 %s1283_s9, 4  ;;  %s218_s10 = int_to_ptr.vmem [resolvable:$true] %s217_s10 }
  0x2a   : > { %s260_s30 = sshll.u32 %s258_s25, 4  ;;  %s296_s9 = scalar_lea.hbm %s1655_s4, %s1387_s27  ;;  %s261_s30 = int_to_ptr.hbm [resolvable:$true] %s260_s30 }
  0x2b   : > { %p961_p1 = pneg %p1429_p5  ;;  %s298_s22 = sshll.u32 %s296_s9, 4  ;;  %s299_s22 = int_to_ptr.hbm [resolvable:$true] %s298_s22 }
  0x2c   : > { %s292_s6 = scalar_lea.vmem [#allocation10], %s1384_s26 }
  0x2d   : > { %s215_s7 = sshll.u32 %s1672_s0, 4  ;;  %p962_p6 = pnand %p961_p1, %p84_p9  ;;  %s216_s7 = int_to_ptr.hbm [resolvable:$true] %s215_s7 }
  0x2e   : > { %s254_s0 = scalar_lea.vmem [#allocation7], %s1384_s26  ;;  %s300_s12 = sshll.u32 %s292_s6, 4  ;;  %s301_s12 = int_to_ptr.vmem [resolvable:$true] %s300_s12 }
  0x2f   : > { %s262_s1 = sshll.u32 %s254_s0, 4  ;;  %309 = sbr.rel (%p1429_p5) target bundleno = 271 (0x10f), region = 40  ;;  %s263_s1 = int_to_ptr.vmem [resolvable:$true] %s262_s1 }
  0x30   : > { %964 = dma.hbm_to_vmem [thread:$0]  (!%p962_p6), %s216_s7, 256, %s218_s10, [#allocation3]  }
  0x31   : > { %971 = dma.hbm_to_vmem [thread:$0]  (!%p1375_p7), %s261_s30, 64, %s263_s1, %s1379_s15  }
  0x32   : > { %977 = dma.hbm_to_vmem [thread:$0]  (!%p1375_p7), %s299_s22, 64, %s301_s12, %s1394_s11  }
  0x34   : > { %1241 = dma.done.wait (%p84_p9), [#allocation3], 256  }
  0x35   : > { %1243 = vsyncadd (%p84_p9), [#allocation3], 4294967040  ;;  %s316_s0 = sand.u32 1, %s1400_s29   ;;  %s1461_s1 = sand.u32 1, %s1262_s19  }
  0x36   : > { %s935_s3 = sshll.u32 %s1461_s1, 10  ;;  %s317_s24 = scalar_lea.sflag [#allocation6], %s316_s0 }
  0x37   : > { %s1464_s6 = scalar_lea.vmem [#allocation5], %s935_s3 }
  0x38   : > { %1245 = dma.done.wait (%p1410_p13), %s317_s24, 16448  }
  0x39   : > { %1247 = vsyncadd (%p1410_p13), %s317_s24, 4294950848  ;;  %s1471_s22 = sshll.u32 %s1461_s1, 2  ;;  %s337_s15 = scalar_lea.sflag [#allocation9], %s316_s0 }
  0x3a   : > { %s330_s14 = scalar_lea.vmem [#allocation7], %s1471_s22  ;;  %s340_s26 = scalar_lea.vmem [#allocation8], %s1471_s22 }
  0x3b   : > { %1249 = dma.done.wait (%p1410_p13), %s337_s15, 128  }
  0x3c   : > { %1251 = vsyncadd (%p1410_p13), %s337_s15, 4294967168  ;;  %v461_v0 = vld [vmem:[%s1464_s6 + $0x1e8] sm:$0xff]  ;;  %v460_v3 = vld [vmem:[%s1464_s6 + $0x1e0] sm:$0xff]  ;;  %s350_s27 = scalar_lea.vmem [#allocation10], %s1471_s22  ;;  %s939_s11 = sshll.u32 %s1461_s1, 5 }
  0x3d   : > { %v457_v1 = vld [vmem:[%s1464_s6 + $0x1c8] sm:$0xff]  ;;  %578 = vmatpush.msra.mxu2 %v461_v0  ;;  %538 = vmatpush.msra.mxu0 %v460_v3  ;;  %v456_v6 = vld [vmem:[%s1464_s6 + $0x1c0] sm:$0xff]  ;;  %v463_v61 = vld [vmem:[%s1464_s6 + $0x1f8] sm:$0xff]  ;;  %s392_s29 = scalar_lea.vmem [#allocation11], %s939_s11  ;;  %s946_s28 = sshll.u32 %s1270_s21, 5 }
  0x3e   : > { %v525_v2 = vld [vmem:[%s1464_s6 + $0x3e8] sm:$0xff]  ;;  %v524_v7 = vld [vmem:[%s1464_s6 + $0x3e0] sm:$0xff]  ;;  %v527_v62 = vld [vmem:[%s1464_s6 + $0x3f8] sm:$0xff]  ;;  %s756_s10 = scalar_lea.hbm %s1656_s5, %s946_s28  ;;  %s758_s13 = sshll.u32 %s392_s29, 4  ;;  %s759_s13 = int_to_ptr.vmem [resolvable:$true] %s758_s13 }
  0x3f   : > { %598 = vmatpush.msra.mxu3 %v525_v2  ;;  %v521_v4 = vld [vmem:[%s1464_s6 + $0x3c8] sm:$0xff]  ;;  %579 = vmatpush.msra.mxu2 %v457_v1  ;;  %v452_v9 = vld [vmem:[%s1464_s6 + $0x1a0] sm:$0xff]  ;;  %v459_v1 = vld [vmem:[%s1464_s6 + $0x1d8] sm:$0xff]  ;;  %s760_s25 = sshll.u32 %s756_s10, 4  ;;  %s743_s21 = scalar_lea.sflag [#allocation4], %s1461_s1  ;;  %s761_s25 = int_to_ptr.hbm [resolvable:$true] %s760_s25 }
  0x40   : > { %v453_v5 = vld [vmem:[%s1464_s6 + $0x1a8] sm:$0xff]  ;;  %v520_v10 = vld [vmem:[%s1464_s6 + $0x3c0] sm:$0xff]  ;;  %539 = vmatpush.msra.mxu0 %v456_v6  ;;  %558 = vmatpush.msra.mxu1 %v524_v7  ;;  %v462_v2 = vld [vmem:[%s1464_s6 + $0x1f0] sm:$0xff]  ;;  %s1202_s30 = sshra.s32 %s761_s25, 4  ;;  %s1208_s3 = scalar_lea.hbm %s1656_s5, 64  ;;  %s1203_s30 = int_to_ptr.hbm [resolvable:$true] %s1202_s30 }
  0x41   : > { %599 = vmatpush.msra.mxu3 %v521_v4  ;;  %v517_v8 = vld [vmem:[%s1464_s6 + $0x3a8] sm:$0xff]  ;;  %580 = vmatpush.msra.mxu2 %v453_v5  ;;  %v448_v13 = vld [vmem:[%s1464_s6 + $0x180] sm:$0xff]  ;;  %v523_v3 = vld [vmem:[%s1464_s6 + $0x3d8] sm:$0xff]  ;;  %s1204_s9 = scalar_lea.hbm %s1203_s30, 32  ;;  %p1209_p10 = scmp.lt.s32.totalorder %s1203_s30, %s1656_s5 }
  0x42   : > { %v449_v11 = vld [vmem:[%s1464_s6 + $0x188] sm:$0xff]  ;;  %v516_v14 = vld [vmem:[%s1464_s6 + $0x3a0] sm:$0xff]  ;;  %540 = vmatpush.msra.mxu0 %v452_v9  ;;  %559 = vmatpush.msra.mxu1 %v520_v10  ;;  %v455_v5 = vld [vmem:[%s1464_s6 + $0x1b8] sm:$0xff]  ;;  %p1205_p7 = scmp.ne.s32.totalorder %s1203_s30, %s1204_s9  ;;  %p1210_p11 = scmp.lt.s32.totalorder %s1208_s3, %s1204_s9 }
  0x43   : > { %v513_v12 = vld [vmem:[%s1464_s6 + $0x388] sm:$0xff]  ;;  %600 = vmatpush.msra.mxu3 %v517_v8  ;;  %581 = vmatpush.msra.mxu2 %v449_v11  ;;  %v444_v17 = vld [vmem:[%s1464_s6 + $0x160] sm:$0xff]  ;;  %v458_v6 = vld [vmem:[%s1464_s6 + $0x1d0] sm:$0xff] }
  0x44   : > { %v445_v15 = vld [vmem:[%s1464_s6 + $0x168] sm:$0xff]  ;;  %v512_v18 = vld [vmem:[%s1464_s6 + $0x380] sm:$0xff]  ;;  %541 = vmatpush.msra.mxu0 %v448_v13  ;;  %560 = vmatpush.msra.mxu1 %v516_v14  ;;  %v526_v7 = vld [vmem:[%s1464_s6 + $0x3f0] sm:$0xff]  ;;  %p1206_p8 = pnand %p1205_p7, %p1417_p0  ;;  %p1211_p12 = por %p1210_p11, %p1209_p10 }
  0x45   : > { %v509_v16 = vld [vmem:[%s1464_s6 + $0x368] sm:$0xff]  ;;  %601 = vmatpush.msra.mxu3 %v513_v12  ;;  %582 = vmatpush.msra.mxu2 %v445_v15  ;;  %v440_v21 = vld [vmem:[%s1464_s6 + $0x140] sm:$0xff]  ;;  %v519_v8 = vld [vmem:[%s1464_s6 + $0x3b8] sm:$0xff] }
  0x46   : > { %v441_v19 = vld [vmem:[%s1464_s6 + $0x148] sm:$0xff]  ;;  %v508_v22 = vld [vmem:[%s1464_s6 + $0x360] sm:$0xff]  ;;  %542 = vmatpush.msra.mxu0 %v444_v17  ;;  %561 = vmatpush.msra.mxu1 %v512_v18  ;;  %v451_v9 = vld [vmem:[%s1464_s6 + $0x198] sm:$0xff]  ;;  %p1207_p9 = pneg %p1206_p8 }
  0x47   : > { %v505_v20 = vld [vmem:[%s1464_s6 + $0x348] sm:$0xff]  ;;  %602 = vmatpush.msra.mxu3 %v509_v16  ;;  %583 = vmatpush.msra.mxu2 %v441_v19  ;;  %v436_v25 = vld [vmem:[%s1464_s6 + $0x120] sm:$0xff]  ;;  %v454_v10 = vld [vmem:[%s1464_s6 + $0x1b0] sm:$0xff] }
  0x48   : > { %v437_v23 = vld [vmem:[%s1464_s6 + $0x128] sm:$0xff]  ;;  %v504_v26 = vld [vmem:[%s1464_s6 + $0x340] sm:$0xff]  ;;  %543 = vmatpush.msra.mxu0 %v440_v21  ;;  %562 = vmatpush.msra.mxu1 %v508_v22  ;;  %v522_v11 = vld [vmem:[%s1464_s6 + $0x3d0] sm:$0xff]  ;;  %p1212_p13 = pnand %p1211_p12, %p1207_p9 }
  0x49   : > { %v501_v24 = vld [vmem:[%s1464_s6 + $0x328] sm:$0xff]  ;;  %603 = vmatpush.msra.mxu3 %v505_v20  ;;  %584 = vmatpush.msra.mxu2 %v437_v23  ;;  %v432_v29 = vld [vmem:[%s1464_s6 + $0x100] sm:$0xff]  ;;  %v515_v12 = vld [vmem:[%s1464_s6 + $0x398] sm:$0xff] }
  0x4a   : > { %v433_v27 = vld [vmem:[%s1464_s6 + $0x108] sm:$0xff]  ;;  %v500_v30 = vld [vmem:[%s1464_s6 + $0x320] sm:$0xff]  ;;  %544 = vmatpush.msra.mxu0 %v436_v25  ;;  %563 = vmatpush.msra.mxu1 %v504_v26  ;;  %v447_v13 = vld [vmem:[%s1464_s6 + $0x178] sm:$0xff] }
  0x4b   : > { %v497_v28 = vld [vmem:[%s1464_s6 + $0x308] sm:$0xff]  ;;  %604 = vmatpush.msra.mxu3 %v501_v24  ;;  %585 = vmatpush.msra.mxu2 %v433_v27  ;;  %v428_v33 = vld [vmem:[%s1464_s6 + $0xe0] sm:$0xff]  ;;  %v450_v14 = vld [vmem:[%s1464_s6 + $0x190] sm:$0xff] }
  0x4c   : > { %v429_v31 = vld [vmem:[%s1464_s6 + $0xe8] sm:$0xff]  ;;  %v496_v34 = vld [vmem:[%s1464_s6 + $0x300] sm:$0xff]  ;;  %545 = vmatpush.msra.mxu0 %v432_v29  ;;  %564 = vmatpush.msra.mxu1 %v500_v30  ;;  %v518_v15 = vld [vmem:[%s1464_s6 + $0x3b0] sm:$0xff] }
  0x4d   : > { %v493_v32 = vld [vmem:[%s1464_s6 + $0x2e8] sm:$0xff]  ;;  %605 = vmatpush.msra.mxu3 %v497_v28  ;;  %586 = vmatpush.msra.mxu2 %v429_v31  ;;  %v424_v37 = vld [vmem:[%s1464_s6 + $0xc0] sm:$0xff]  ;;  %v511_v16 = vld [vmem:[%s1464_s6 + $0x378] sm:$0xff] }
  0x4e   : > { %v425_v35 = vld [vmem:[%s1464_s6 + $0xc8] sm:$0xff]  ;;  %v492_v38 = vld [vmem:[%s1464_s6 + $0x2e0] sm:$0xff]  ;;  %546 = vmatpush.msra.mxu0 %v428_v33  ;;  %565 = vmatpush.msra.mxu1 %v496_v34  ;;  %v443_v17 = vld [vmem:[%s1464_s6 + $0x158] sm:$0xff] }
  0x4f   : > { %v489_v36 = vld [vmem:[%s1464_s6 + $0x2c8] sm:$0xff]  ;;  %606 = vmatpush.msra.mxu3 %v493_v32  ;;  %587 = vmatpush.msra.mxu2 %v425_v35  ;;  %v420_v41 = vld [vmem:[%s1464_s6 + $0xa0] sm:$0xff]  ;;  %v446_v18 = vld [vmem:[%s1464_s6 + $0x170] sm:$0xff] }
  0x50   : > { %v421_v39 = vld [vmem:[%s1464_s6 + $0xa8] sm:$0xff]  ;;  %v488_v42 = vld [vmem:[%s1464_s6 + $0x2c0] sm:$0xff]  ;;  %547 = vmatpush.msra.mxu0 %v424_v37  ;;  %566 = vmatpush.msra.mxu1 %v492_v38  ;;  %v514_v19 = vld [vmem:[%s1464_s6 + $0x390] sm:$0xff] }
  0x51   : > { %v485_v40 = vld [vmem:[%s1464_s6 + $0x2a8] sm:$0xff]  ;;  %607 = vmatpush.msra.mxu3 %v489_v36  ;;  %588 = vmatpush.msra.mxu2 %v421_v39  ;;  %v416_v45 = vld [vmem:[%s1464_s6 + $0x80] sm:$0xff]  ;;  %v507_v20 = vld [vmem:[%s1464_s6 + $0x358] sm:$0xff] }
  0x52   : > { %v417_v43 = vld [vmem:[%s1464_s6 + $0x88] sm:$0xff]  ;;  %v484_v46 = vld [vmem:[%s1464_s6 + $0x2a0] sm:$0xff]  ;;  %548 = vmatpush.msra.mxu0 %v420_v41  ;;  %567 = vmatpush.msra.mxu1 %v488_v42  ;;  %v439_v21 = vld [vmem:[%s1464_s6 + $0x138] sm:$0xff] }
  0x53   : > { %v481_v44 = vld [vmem:[%s1464_s6 + $0x288] sm:$0xff]  ;;  %608 = vmatpush.msra.mxu3 %v485_v40  ;;  %589 = vmatpush.msra.mxu2 %v417_v43  ;;  %v412_v49 = vld [vmem:[%s1464_s6 + $0x60] sm:$0xff]  ;;  %v442_v22 = vld [vmem:[%s1464_s6 + $0x150] sm:$0xff] }
  0x54   : > { %v413_v47 = vld [vmem:[%s1464_s6 + $0x68] sm:$0xff]  ;;  %v480_v50 = vld [vmem:[%s1464_s6 + $0x280] sm:$0xff]  ;;  %549 = vmatpush.msra.mxu0 %v416_v45  ;;  %568 = vmatpush.msra.mxu1 %v484_v46  ;;  %v510_v23 = vld [vmem:[%s1464_s6 + $0x370] sm:$0xff] }
  0x55   : > { %v477_v48 = vld [vmem:[%s1464_s6 + $0x268] sm:$0xff]  ;;  %609 = vmatpush.msra.mxu3 %v481_v44  ;;  %590 = vmatpush.msra.mxu2 %v413_v47  ;;  %v408_v53 = vld [vmem:[%s1464_s6 + $0x40] sm:$0xff]  ;;  %v503_v24 = vld [vmem:[%s1464_s6 + $0x338] sm:$0xff] }
  0x56   : > { %v409_v51 = vld [vmem:[%s1464_s6 + $0x48] sm:$0xff]  ;;  %v476_v54 = vld [vmem:[%s1464_s6 + $0x260] sm:$0xff]  ;;  %550 = vmatpush.msra.mxu0 %v412_v49  ;;  %569 = vmatpush.msra.mxu1 %v480_v50  ;;  %v435_v25 = vld [vmem:[%s1464_s6 + $0x118] sm:$0xff] }
  0x57   : > { %v473_v52 = vld [vmem:[%s1464_s6 + $0x248] sm:$0xff]  ;;  %610 = vmatpush.msra.mxu3 %v477_v48  ;;  %591 = vmatpush.msra.mxu2 %v409_v51  ;;  %v404_v57 = vld [vmem:[%s1464_s6 + $0x20] sm:$0xff]  ;;  %v438_v26 = vld [vmem:[%s1464_s6 + $0x130] sm:$0xff] }
  0x58   : > { %v405_v55 = vld [vmem:[%s1464_s6 + $0x28] sm:$0xff]  ;;  %v472_v58 = vld [vmem:[%s1464_s6 + $0x240] sm:$0xff]  ;;  %551 = vmatpush.msra.mxu0 %v408_v53  ;;  %570 = vmatpush.msra.mxu1 %v476_v54  ;;  %v506_v27 = vld [vmem:[%s1464_s6 + $0x350] sm:$0xff] }
  0x59   : > { %v469_v56 = vld [vmem:[%s1464_s6 + $0x228] sm:$0xff]  ;;  %611 = vmatpush.msra.mxu3 %v473_v52  ;;  %592 = vmatpush.msra.mxu2 %v405_v55  ;;  %v400_v63 = vld [vmem:[%s1464_s6] sm:$0xff]  ;;  %v499_v28 = vld [vmem:[%s1464_s6 + $0x318] sm:$0xff] }
  0x5a   : > { %v401_v59 = vld [vmem:[%s1464_s6 + $0x8] sm:$0xff]  ;;  %552 = vmatpush.msra.mxu0 %v404_v57  ;;  %571 = vmatpush.msra.mxu1 %v472_v58  ;;  %v468_v0 = vld [vmem:[%s1464_s6 + $0x220] sm:$0xff]  ;;  %v431_v29 = vld [vmem:[%s1464_s6 + $0xf8] sm:$0xff] }
  0x5b   : > { %v465_v60 = vld [vmem:[%s1464_s6 + $0x208] sm:$0xff]  ;;  %612 = vmatpush.msra.mxu3 %v469_v56  ;;  %593 = vmatpush.msra.mxu2 %v401_v59  ;;  %v464_v4 = vld [vmem:[%s1464_s6 + $0x200] sm:$0xff]  ;;  %v434_v30 = vld [vmem:[%s1464_s6 + $0x110] sm:$0xff] }
  0x5c   : > { %553 = vmatpush.msra.mxu0 %v400_v63  ;;  %572 = vmatpush.msra.mxu1 %v468_v0  ;;  %v502_v31 = vld [vmem:[%s1464_s6 + $0x330] sm:$0xff]  ;;  %v495_v32 = vld [vmem:[%s1464_s6 + $0x2f8] sm:$0xff] }
  0x5d   : > { %613 = vmatpush.msra.mxu3 %v465_v60  ;;  %658 = vmatpush.msrb.mxu2 %v463_v61  ;;  %v427_v33 = vld [vmem:[%s1464_s6 + $0xd8] sm:$0xff]  ;;  %v430_v34 = vld [vmem:[%s1464_s6 + $0xf0] sm:$0xff] }
  0x5e   : > { %618 = vmatpush.msrb.mxu0 %v462_v2  ;;  %573 = vmatpush.msra.mxu1 %v464_v4  ;;  %v498_v35 = vld [vmem:[%s1464_s6 + $0x310] sm:$0xff]  ;;  %v491_v36 = vld [vmem:[%s1464_s6 + $0x2d8] sm:$0xff]  ;;  %v528_v2 = vld [vmem:[%s330_s14] sm:$0xf] }
  0x5f   : > { %678 = vmatpush.msrb.mxu3 %v527_v62  ;;  %659 = vmatpush.msrb.mxu2 %v459_v1  ;;  %v423_v37 = vld [vmem:[%s1464_s6 + $0xb8] sm:$0xff]  ;;  %v426_v38 = vld [vmem:[%s1464_s6 + $0xd0] sm:$0xff]  ;;  %v531_v4 = vperm.slane %v528_v2, 1 }
  0x60   : > { %619 = vmatpush.msrb.mxu0 %v458_v6  ;;  %638 = vmatpush.msrb.mxu1 %v526_v7  ;;  %v398_v39 = vld [vmem:[#allocation2] sm:$0xff]  ;;  %v419_v41 = vld [vmem:[%s1464_s6 + $0x98] sm:$0xff] }
  0x61   : > { %679 = vmatpush.msrb.mxu3 %v523_v3  ;;  %660 = vmatpush.msrb.mxu2 %v455_v5  ;;  %v494_v40 = vld [vmem:[%s1464_s6 + $0x2f0] sm:$0xff]  ;;  %v487_v42 = vld [vmem:[%s1464_s6 + $0x2b8] sm:$0xff]  ;;  %v530_v3 = vperm.slane %v528_v2, 0  ;;  %v698_v5 = vld [vmem:[%s340_s26] sm:$0xf] }
  0x62   : > { %620 = vmatpush.msrb.mxu0 %v454_v10  ;;  %639 = vmatpush.msrb.mxu1 %v522_v11  ;;  %v399_v43 = vld [vmem:[#allocation2 + $0x8] sm:$0xff]  ;;  %v422_v44 = vld [vmem:[%s1464_s6 + $0xb0] sm:$0xff]  ;;  %v701_v11 = vperm.slane %v698_v5, 1 }
  0x63   : > { %680 = vmatpush.msrb.mxu3 %v519_v8  ;;  %661 = vmatpush.msrb.mxu2 %v451_v9  ;;  %v490_v45 = vld [vmem:[%s1464_s6 + $0x2d0] sm:$0xff]  ;;  %v415_v46 = vld [vmem:[%s1464_s6 + $0x78] sm:$0xff] }
  0x64   : > { %621 = vmatpush.msrb.mxu0 %v450_v14  ;;  %640 = vmatpush.msrb.mxu1 %v518_v15  ;;  %v483_v47 = vld [vmem:[%s1464_s6 + $0x298] sm:$0xff]  ;;  %v418_v48 = vld [vmem:[%s1464_s6 + $0x90] sm:$0xff] }
  0x65   : > { %681 = vmatpush.msrb.mxu3 %v515_v12  ;;  %662 = vmatpush.msrb.mxu2 %v447_v13  ;;  %v486_v49 = vld [vmem:[%s1464_s6 + $0x2b0] sm:$0xff]  ;;  %v411_v50 = vld [vmem:[%s1464_s6 + $0x58] sm:$0xff]  ;;  %v700_v12 = vperm.slane %v698_v5, 0 }
  0x66   : > { %622 = vmatpush.msrb.mxu0 %v446_v18  ;;  %641 = vmatpush.msrb.mxu1 %v514_v19  ;;  %v479_v51 = vld [vmem:[%s1464_s6 + $0x278] sm:$0xff]  ;;  %v414_v52 = vld [vmem:[%s1464_s6 + $0x70] sm:$0xff] }
  0x67   : > { %682 = vmatpush.msrb.mxu3 %v511_v16  ;;  %663 = vmatpush.msrb.mxu2 %v443_v17  ;;  %v482_v53 = vld [vmem:[%s1464_s6 + $0x290] sm:$0xff]  ;;  %v407_v54 = vld [vmem:[%s1464_s6 + $0x38] sm:$0xff] }
  0x68   : > { %623 = vmatpush.msrb.mxu0 %v442_v22  ;;  %642 = vmatpush.msrb.mxu1 %v510_v23  ;;  %v475_v55 = vld [vmem:[%s1464_s6 + $0x258] sm:$0xff]  ;;  %v410_v56 = vld [vmem:[%s1464_s6 + $0x50] sm:$0xff] }
  0x69   : > { %683 = vmatpush.msrb.mxu3 %v507_v20  ;;  %664 = vmatpush.msrb.mxu2 %v439_v21  ;;  %v478_v57 = vld [vmem:[%s1464_s6 + $0x270] sm:$0xff]  ;;  %v403_v58 = vld [vmem:[%s1464_s6 + $0x18] sm:$0xff]  ;;  %v532_v21 = vperm.slane %v528_v2, 2 }
  0x6a   : > { %624 = vmatpush.msrb.mxu0 %v438_v26  ;;  %643 = vmatpush.msrb.mxu1 %v506_v27  ;;  %v471_v59 = vld [vmem:[%s1464_s6 + $0x238] sm:$0xff]  ;;  %v406_v60 = vld [vmem:[%s1464_s6 + $0x30] sm:$0xff] }
  0x6b   : > { %684 = vmatpush.msrb.mxu3 %v503_v24  ;;  %665 = vmatpush.msrb.mxu2 %v435_v25  ;;  %v474_v61 = vld [vmem:[%s1464_s6 + $0x250] sm:$0xff]  ;;  %v467_v62 = vld [vmem:[%s1464_s6 + $0x218] sm:$0xff]  ;;  %v533_v24 = vperm.slane %v528_v2, 3 }
  0x6c   : > { %625 = vmatpush.msrb.mxu0 %v434_v30  ;;  %644 = vmatpush.msrb.mxu1 %v502_v31  ;;  %v402_v63 = vld [vmem:[%s1464_s6 + $0x10] sm:$0xff]  ;;  %v702_v30 = vperm.slane %v698_v5, 2 }
  0x6d   : > { %685 = vmatpush.msrb.mxu3 %v499_v28  ;;  %666 = vmatpush.msrb.mxu2 %v431_v29  ;;  %v470_v0 = vld [vmem:[%s1464_s6 + $0x230] sm:$0xff] }
  0x6e   : > { %626 = vmatpush.msrb.mxu0 %v430_v34  ;;  %645 = vmatpush.msrb.mxu1 %v498_v35  ;;  %v466_v1 = vld [vmem:[%s1464_s6 + $0x210] sm:$0xff] }
  0x6f   : > { %686 = vmatpush.msrb.mxu3 %v495_v32  ;;  %667 = vmatpush.msrb.mxu2 %v427_v33  ;;  %v712_v8 = vld [vmem:[%s350_s27] sm:$0xf] }
  0x70   : > { %627 = vmatpush.msrb.mxu0 %v426_v38  ;;  %594 = vmatmul.f32.vlgmr.msra.gmra.mxu2 %v398_v39  ;;  %v715_v16 = vperm.slane %v712_v8, 1  ;;  %v714_v18 = vperm.slane %v712_v8, 0 }
  0x71   : > { %687 = vmatpush.msrb.mxu3 %v491_v36  ;;  %668 = vmatpush.msrb.mxu2 %v423_v37  ;;  %v716_v36 = vperm.slane %v712_v8, 2  ;;  %v703_v37 = vperm.slane %v698_v5, 3 }
  0x72   : > { %646 = vmatpush.msrb.mxu1 %v494_v40  ;;  %614 = vmatmul.f32.vlgmr.msra.gmra.mxu3 %v399_v43 }
  0x73   : > { %669 = vmatpush.msrb.mxu2 %v419_v41  ;;  %688 = vmatpush.msrb.mxu3 %v487_v42  ;;  %v717_v41 = vperm.slane %v712_v8, 3 }
  0x74   : > { %628 = vmatpush.msrb.mxu0 %v422_v44  ;;  %647 = vmatpush.msrb.mxu1 %v490_v45 }
  0x75   : > { %670 = vmatpush.msrb.mxu2 %v415_v46  ;;  %689 = vmatpush.msrb.mxu3 %v483_v47 }
  0x76   : > { %629 = vmatpush.msrb.mxu0 %v418_v48  ;;  %648 = vmatpush.msrb.mxu1 %v486_v49 }
  0x77   : > { %671 = vmatpush.msrb.mxu2 %v411_v50  ;;  %690 = vmatpush.msrb.mxu3 %v479_v51 }
  0x78   : > { %554 = vmatmul.f32.vlgmr.msra.gmra.mxu0 %v398_v39  ;;  %649 = vmatpush.msrb.mxu1 %v482_v53 }
  0x79   : > { %630 = vmatpush.msrb.mxu0 %v414_v52  ;;  %672 = vmatpush.msrb.mxu2 %v407_v54 }
  0x7a   : > { %691 = vmatpush.msrb.mxu3 %v475_v55  ;;  %574 = vmatmul.f32.vlgmr.msra.gmra.mxu1 %v399_v43 }
  0x7b   : > { %631 = vmatpush.msrb.mxu0 %v410_v56  ;;  %650 = vmatpush.msrb.mxu1 %v478_v57 }
  0x7c   : > { %673 = vmatpush.msrb.mxu2 %v403_v58  ;;  %692 = vmatpush.msrb.mxu3 %v471_v59 }
  0x7d   : > { %674 = vmatmul.f32.vlgmr.msrb.gmra.mxu2 %v398_v39  ;;  %632 = vmatpush.msrb.mxu0 %v406_v60 }
  0x7e   : > { %651 = vmatpush.msrb.mxu1 %v474_v61  ;;  %693 = vmatpush.msrb.mxu3 %v467_v62 }
  0x7f   : > { %694 = vmatmul.f32.vlgmr.msrb.gmra.mxu3 %v399_v43  ;;  %633 = vmatpush.msrb.mxu0 %v402_v63 }
  0x80   : > { %652 = vmatpush.msrb.mxu1 %v470_v0  ;;  %634 = vmatmul.f32.vlgmr.msrb.gmra.mxu0 %v398_v39 }
  0x82   : > { %653 = vmatpush.msrb.mxu1 %v466_v1 }
  0x83   : > { %654 = vmatmul.f32.vlgmr.msrb.gmra.mxu1 %v399_v43 }
  0xf3   : > { %v595_v7 = vpop.f32.mrf.mxu2 }
  0xf4   : > { %v596_v10 = vadd.f32 %v595_v7, %v531_v4 }
  0xf5   : > { %v555_v6 = vpop.f32.mrf.mxu0  ;;  %v615_v13 = vpop.f32.mrf.mxu3 }
  0xf6   : > { %v556_v9 = vadd.f32 %v555_v6, %v530_v3  ;;  %v616_v15 = vadd.f32 %v615_v13, %v596_v10 }
  0xf7   : > { %v575_v14 = vpop.f32.mrf.mxu1 }
  0xf8   : > { %v576_v17 = vadd.f32 %v575_v14, %v556_v9  ;;  %v709_v19 = vmul.f32 %v701_v11, %v616_v15 }
  0xfa   : > { %v708_v20 = vmul.f32 %v700_v12, %v576_v17  ;;  %v723_v22 = vadd.f32 %v715_v16, %v709_v19 }
  0xfc   : > { %v722_v23 = vadd.f32 %v714_v18, %v708_v20  ;;  %vm727_vm0 = vcmp.gt.f32.partialorder %v723_v22, 0.0  ;;  %v731_v25 = vmul.f32 0.01, %v723_v22 }
  0xfd   : > { %v635_v26 = vpop.f32.mrf.mxu0 }
  0xfe   : > { %vm726_vm1 = vcmp.gt.f32.partialorder %v722_v23, 0.0  ;;  %v730_v27 = vmul.f32 0.01, %v722_v23  ;;  %v636_v28 = vadd.f32 %v635_v26, %v532_v21  ;;  %v735_v29 = vsel %vm727_vm0, %v723_v22, %v731_v25 }
  0xff   : > { %739 = vst [vmem:[%s392_s29 + $0x8] sm:$0xff] %v735_v29 }
 0x100   : > { %v675_v31 = vpop.f32.mrf.mxu2  ;;  %v734_v32 = vsel %vm726_vm1, %v722_v23, %v730_v27  ;;  %v655_v33 = vpop.f32.mrf.mxu1 }
 0x101   : > { %v676_v34 = vadd.f32 %v675_v31, %v533_v24  ;;  %738 = vst [vmem:[%s392_s29] sm:$0xff] %v734_v32  ;;  %v656_v35 = vadd.f32 %v655_v33, %v636_v28 }
 0x102   : > { %v695_v38 = vpop.f32.mrf.mxu3 }
 0x103   : > { %v710_v39 = vmul.f32 %v702_v30, %v656_v35  ;;  %v696_v40 = vadd.f32 %v695_v38, %v676_v34 }
 0x105   : > { %v724_v42 = vadd.f32 %v716_v36, %v710_v39  ;;  %v711_v43 = vmul.f32 %v703_v37, %v696_v40 }
 0x107   : > { %vm728_vm2 = vcmp.gt.f32.partialorder %v724_v42, 0.0  ;;  %v732_v44 = vmul.f32 0.01, %v724_v42  ;;  %v725_v45 = vadd.f32 %v717_v41, %v711_v43 }
 0x109   : > { %v736_v46 = vsel %vm728_vm2, %v724_v42, %v732_v44  ;;  %vm729_vm3 = vcmp.gt.f32.partialorder %v725_v45, 0.0  ;;  %v733_v47 = vmul.f32 0.01, %v725_v45 }
 0x10a   : > { %740 = vst [vmem:[%s392_s29 + $0x10] sm:$0xff] %v736_v46 }
 0x10b   : > { %v737_v48 = vsel %vm729_vm3, %v725_v45, %v733_v47 }
 0x10c   : > { %741 = vst [vmem:[%s392_s29 + $0x18] sm:$0xff] %v737_v48 }
 0x10d   : > { %1215 = shalt.err (!%p1212_p13)
}
 0x10e   : > { %959 = dma.vmem_to_hbm [thread:$0]  (%p1417_p0), %s759_s13, 512, %s761_s25, %s743_s21  }
 0x10f PF: > { %s772_s1 = sand.u32 1, %s1258_s18   ;;  %p979_p4 = pnand %p923_p3, %p1421_p2 }
 0x110   : > { %s773_s22 = scalar_lea.sflag [#allocation4], %s772_s1 }
 0x111   : > { %p980_p5 = pneg %p979_p4 }
 0x113   : > { %1253 = dma.done.wait (%p980_p5), %s773_s22, 512  }
 0x114   : > { %1255 = vsyncadd (%p980_p5), %s773_s22, 4294966784  ;;  %s25_s23 = sadd.s32 1, %s1278_s23   ;;  %s1674_s14 = sld [smem:[#allocation18_spill]] }
 0x115   : > { %p22_p1 = scmp.ge.s32.totalorder %s25_s23, 4   ;;  %s1675_s21 = sld [smem:[#allocation16_spill]] }
 0x116   : > { %s1676_s22 = sld [smem:[#allocation17_spill]]  ;;  %s1677_s18 = smov %s1262_s19 }
 0x117   : > { %s1678_s19 = smov %s1266_s20  ;;  %24 = sbr.rel (!%p22_p1) target bundleno = 13 (0xd), region = 126 }
 0x11a   : > { %s1679_s20 = smov %s1674_s14 }
 0x11c   :  { %779 = vsyncpa [#allocation3], 1 }
 0x11d   :  { %781 = vsyncpa [#allocation3 + $0x1], 1 }
 0x11e   :  { %782 = vsyncpa [#allocation6], 1 }
 0x11f   :  { %784 = vsyncpa [#allocation6 + $0x1], 1 }
 0x120   :  { %785 = vsyncpa [#allocation9], 1 }
 0x121   :  { %787 = vsyncpa [#allocation9 + $0x1], 1 }
 0x122   :  { %788 = vsyncpa [#allocation4], 1 }
 0x123   :  { %790 = vsyncpa [#allocation4 + $0x1], 1 }

</bundles_post_ra>
